<compile_context>
chip_gen: v6e
topology: v6e:2x2x1
jax: 0.10.0
libtpu: 0.0.40
codegen_flags: <defaults>
</compile_context>

<pallas_src>
import jax
import jax.numpy as jnp
from jax.experimental import pallas as pl
from jax.experimental.pallas import tpu as pltpu


_TARGET_TILE_BYTES = 2 * 1024 * 1024  # ~2 MiB per operand tile -> ~12 MiB double-buffered total.


def _scale_skip_kernel(params_ref, x_ref, y_ref, o_ref):
    # params_ref lives in SMEM: [x_scale, x_bias, y_scale, y_bias]. Read each scalar once.
    xs = params_ref[0]
    xb = params_ref[1]
    ys = params_ref[2]
    yb = params_ref[3]
    bias = xb + yb  # fold the two biases -> one fewer vector add per vreg
    o_ref[...] = (x_ref[...] * xs + y_ref[...] * ys + bias).astype(o_ref.dtype)


def scale_skip_1d(x, y, params):
    """ScaleSkip1D forward. x, y: same shape (e.g. (B, N, C)); params: (4,) float32 scalars."""
    assert x.shape == y.shape, "x and y must have the same shape"
    orig_shape = x.shape
    orig_dtype = x.dtype
    total = x.size

    x_flat = x.reshape(-1)
    y_flat = y.reshape(-1)

    # Pick the widest lane-dense last dim (multiple of 128) that divides the element count.
    width = None
    for w in (2048, 1024, 512, 256, 128):
        if total % w == 0:
            width = w
            break

    pad = 0
    if width is None:
        # Irregular element count: pad flat arrays up to a multiple of 128 lanes.
        width = 128
        pad = (-total) % width
        x_flat = jnp.pad(x_flat, (0, pad))
        y_flat = jnp.pad(y_flat, (0, pad))

    padded_total = total + pad
    rows = padded_total // width

    # Row-block size targeting ~2 MiB tiles; multiple of 8 (sublane) when tiling partially.
    elem_bytes = x.dtype.itemsize
    target_rows = max(8, _TARGET_TILE_BYTES // (width * elem_bytes))
    target_rows = (target_rows // 8) * 8
    block_rows = rows if rows <= target_rows else target_rows

    x2 = x_flat.reshape(rows, width)
    y2 = y_flat.reshape(rows, width)

    grid = (pl.cdiv(rows, block_rows),)

    out2 = pl.pallas_call(
        _scale_skip_kernel,
        out_shape=jax.ShapeDtypeStruct((rows, width), orig_dtype),
        grid=grid,
        in_specs=[
            pl.BlockSpec(memory_space=pltpu.SMEM),                 # scalar params (SMEM)
            pl.BlockSpec((block_rows, width), lambda i: (i, 0)),   # x row-block
            pl.BlockSpec((block_rows, width), lambda i: (i, 0)),   # y row-block
        ],
        out_specs=pl.BlockSpec((block_rows, width), lambda i: (i, 0)),
        compiler_params=pltpu.CompilerParams(
            dimension_semantics=("parallel",),
            vmem_limit_bytes=32 * 1024 * 1024,
        ),
    )(params, x2, y2)

    out_flat = out2.reshape(-1)
    if pad:
        out_flat = out_flat[:total]
    return out_flat.reshape(orig_shape)


def init_scale_skip_params(key, size=0.01):
    """Deterministic stand-in for nn.init.trunc_normal_ (mean 1/0, std=size, trunc at ±2σ)."""
    k1, k2, k3, k4 = jax.random.split(key, 4)
    tn = lambda k: jax.random.truncated_normal(k, -2.0, 2.0, (), jnp.float32) * size
    x_skipscale = 1.0 + tn(k1)
    x_skipbias = 0.0 + tn(k2)
    y_skipscale = 1.0 + tn(k3)
    y_skipbias = 0.0 + tn(k4)
    return jnp.stack([x_skipscale, x_skipbias, y_skipscale, y_skipbias]).astype(jnp.float32)


def _reference(x, y, params):
    xs, xb, ys, yb = [params[i] for i in range(4)]
    return (x * xs + xb) + (y * ys + yb)


if __name__ == "__main__":
    key = jax.random.PRNGKey(0)
    kx, ky, kp, kx2, ky2 = jax.random.split(key, 5)

    params = init_scale_skip_params(kp, size=0.01)

    # Case 1: small ViT-like token sequence (B, N, C); element count divisible by 128.
    B, N, C = 2, 8, 32
    x = jax.random.normal(kx, (B, N, C), dtype=jnp.float32)
    y = jax.random.normal(ky, (B, N, C), dtype=jnp.float32)
    out = jax.block_until_ready(scale_skip_1d(x, y, params))
    assert out.shape == (B, N, C)
    assert jnp.allclose(out, _reference(x, y, params), atol=1e-6), "mismatch vs reference (case 1)"

    # Case 2: irregular shape exercising the pad/unpad fallback path.
    x2 = jax.random.normal(kx2, (3, 5, 7), dtype=jnp.float32)
    y2 = jax.random.normal(ky2, (3, 5, 7), dtype=jnp.float32)
    out2 = jax.block_until_ready(scale_skip_1d(x2, y2, params))
    assert out2.shape == (3, 5, 7)
    assert jnp.allclose(out2, _reference(x2, y2, params), atol=1e-6), "mismatch vs reference (case 2)"

    print("KERNEL_OK")
</pallas_src>

<mosaic_0001>
module attributes {stable_mosaic.version = 11 : i64} {
  func.func @_scale_skip_kernel(%arg0: i32, %arg1: memref<4xf32, #tpu.memory_space<smem>>, %arg2: memref<1x512xf32, #tpu.memory_space<vmem>>, %arg3: memref<1x512xf32, #tpu.memory_space<vmem>>, %arg4: memref<1x512xf32, #tpu.memory_space<vmem>>) attributes {dimension_semantics = [#tpu.dimension_semantics<parallel>], iteration_bounds = array<i64: 1>, scalar_prefetch = 0 : i64, scratch_operands = 0 : i64, tpu.core_type = #tpu.core_type<tc>, window_params = [{transform_indices = @transform_0, window_bounds = array<i64: 4>}, {transform_indices = @transform_1, window_bounds = array<i64: 1, 512>}, {transform_indices = @transform_2, window_bounds = array<i64: 1, 512>}, {transform_indices = @transform_3, window_bounds = array<i64: 1, 512>}]} {
    %c0 = arith.constant 0 : index
    %0 = memref.load %arg1[%c0] : memref<4xf32, #tpu.memory_space<smem>>
    %c1 = arith.constant 1 : index
    %1 = memref.load %arg1[%c1] : memref<4xf32, #tpu.memory_space<smem>>
    %c2 = arith.constant 2 : index
    %2 = memref.load %arg1[%c2] : memref<4xf32, #tpu.memory_space<smem>>
    %c3 = arith.constant 3 : index
    %3 = memref.load %arg1[%c3] : memref<4xf32, #tpu.memory_space<smem>>
    %4 = arith.addf %1, %3 : f32
    %c0_0 = arith.constant 0 : index
    %c0_1 = arith.constant 0 : index
    %5 = vector.load %arg2[%c0_0, %c0_1] : memref<1x512xf32, #tpu.memory_space<vmem>>, vector<1x512xf32>
    %6 = vector.broadcast %0 : f32 to vector<1x512xf32>
    %7 = arith.mulf %5, %6 : vector<1x512xf32>
    %c0_2 = arith.constant 0 : index
    %c0_3 = arith.constant 0 : index
    %8 = vector.load %arg3[%c0_2, %c0_3] : memref<1x512xf32, #tpu.memory_space<vmem>>, vector<1x512xf32>
    %9 = vector.broadcast %2 : f32 to vector<1x512xf32>
    %10 = arith.mulf %8, %9 : vector<1x512xf32>
    %11 = arith.addf %7, %10 : vector<1x512xf32>
    %12 = vector.broadcast %4 : f32 to vector<1x512xf32>
    %13 = arith.addf %11, %12 : vector<1x512xf32>
    %c0_4 = arith.constant 0 : index
    %c0_5 = arith.constant 0 : index
    %14 = vector.load %arg4[%c0_4, %c0_5] : memref<1x512xf32, #tpu.memory_space<vmem>>, vector<1x512xf32>
    tpu.vector_store %arg4[%c0_4, %c0_5], %13 {strides = array<i32>} : memref<1x512xf32, #tpu.memory_space<vmem>>, vector<1x512xf32>,
    return
  }
  func.func @transform_0(%arg0: i32) -> i32 {
    %c0_i32 = arith.constant 0 : i32
    %c0_i32_0 = arith.constant 0 : i32
    return %c0_i32 : i32
  }
  func.func @transform_1(%arg0: i32) -> (i32, i32) {
    %c0_i32 = arith.constant 0 : i32
    %c0_i32_0 = arith.constant 0 : i32
    return %arg0, %c0_i32 : i32, i32
  }
  func.func @transform_2(%arg0: i32) -> (i32, i32) {
    %c0_i32 = arith.constant 0 : i32
    %c0_i32_0 = arith.constant 0 : i32
    return %arg0, %c0_i32 : i32, i32
  }
  func.func @transform_3(%arg0: i32) -> (i32, i32) {
    %c0_i32 = arith.constant 0 : i32
    %c0_i32_0 = arith.constant 0 : i32
    return %arg0, %c0_i32 : i32, i32
  }
}

</mosaic_0001>

<bundles_post_ra>
// kernel: tpu_custom_call.1
= control target key start
LH: loop header
LB: loop body
LE: loop exit
PB: predicated region body
PF: predicated region fallthrough
CT: control target
= control target key end

     0   :  { %8 = vsyncpa [#allocation5], 0  ;;  %s205_s0 = inlined_call_operand.hbm [shape: f32[4], index: 0, kind: input, shape index: {}]   ;;  %s206_s1 = inlined_call_operand.hbm [shape: f32[1,512], index: 1, kind: input, shape index: {}]   ;;  %s207_s2 = inlined_call_operand.hbm [shape: f32[1,512], index: 2, kind: input, shape index: {}]   ;;  %s208_s3 = inlined_call_operand.hbm [shape: f32[1,512], index: 3, kind: output, shape index: {}]  }
   0x1   :  { %9 = vsyncpa [#allocation3], 0 }
   0x2   :  { %10 = vsyncpa [#allocation8], 0 }
   0x3   :  { %11 = vsyncpa [#allocation4], 0  ;;  %s169_s12 = smov [#allocation2]   ;;  %s170_s15 = smov [#allocation6]  }
   0x4   :  { %19 = dma.hbm_to_smem %s205_s0, 16, %s169_s12, [#allocation5]  }
   0x5   :  { %s26_s16 = sshll.u32 %s170_s15, 4  ;;  %s171_s17 = smov [#allocation7]   ;;  %s27_s16 = int_to_ptr.vmem [resolvable:$true] %s26_s16 }
   0x6   :  { %s36_s18 = sshll.u32 %s171_s17, 4  ;;  %s109_s19 = scalar_lea.vmem %s27_s16, 64  ;;  %s37_s18 = int_to_ptr.vmem [resolvable:$true] %s36_s18 }
   0x7   :  { %p110_p0 = scmp.ne.s32.totalorder %s27_s16, %s109_s19  ;;  %p114_p1 = scmp.lt.s32.totalorder %s27_s16, %s27_s16 }
   0x8   :  { %p115_p2 = scmp.lt.s32.totalorder %s109_s19, %s109_s19 }
   0xa   :  { %p116_p3 = por %p115_p2, %p114_p1 }
   0xc   :  { %p117_p4 = pnand %p116_p3, %p110_p0 }
   0xe   :  { %120 = shalt.err (!%p117_p4)
}
   0xf   :  { %29 = dma.hbm_to_vmem [thread:$0]  %s206_s1, 64, %s27_s16, [#allocation3]  }
  0x10   :  { %s129_s22 = scalar_lea.vmem %s37_s18, 64  ;;  %p134_p6 = scmp.lt.s32.totalorder %s37_s18, %s37_s18 }
  0x11   :  { %p130_p5 = scmp.ne.s32.totalorder %s37_s18, %s129_s22  ;;  %p135_p7 = scmp.lt.s32.totalorder %s129_s22, %s129_s22 }
  0x13   :  { %p136_p8 = por %p135_p7, %p134_p6 }
  0x15   :  { %p137_p9 = pnand %p136_p8, %p130_p5 }
  0x17   :  { %140 = shalt.err (!%p137_p9)
}
  0x18   :  { %39 = dma.hbm_to_vmem [thread:$0]  %s207_s2, 64, %s37_s18, [#allocation8]  }
  0x19   :  { %161 = dma.done.wait [#allocation5], 16  }
  0x1a   :  { %162 = vsyncadd [#allocation5], 4294967280 }
  0x1b   :  { %163 = dma.done.wait [#allocation3], 64  }
  0x1c   :  { %164 = vsyncadd [#allocation3], 4294967232 }
  0x1d   :  { %165 = dma.done.wait [#allocation8], 64  }
  0x1e   :  { %166 = vsyncadd [#allocation8], 4294967232 }
  0x1f   :  { %49 = sfence }
  0x20   :  { %s50_s1 = sld [smem:[#allocation2]]  ;;  %v55_v0 = vld [vmem:[#allocation6] sm:$0xf]  ;;  %v58_v2 = vld [vmem:[#allocation7] sm:$0xf]  ;;  %v64_v5 = vlaneseq  ;;  %s172_s2 = smov [#allocation9]  }
  0x21   :  { %s86_s24 = sld [smem:[#allocation2 + $0x1]]  ;;  %s75_s28 = sshll.u32 %s172_s2, 4  ;;  %s76_s28 = int_to_ptr.vmem [resolvable:$true] %s75_s28 }
  0x22   :  { %s87_s25 = sld [smem:[#allocation2 + $0x2]]  ;;  %vm66_vm0 = vcmp.lt.s32.totalorder %v64_v5, 512  ;;  %s141_s29 = scalar_lea.vmem %s76_s28, 64 }
  0x23   :  { %s88_s26 = sld [smem:[#allocation2 + $0x3]]  ;;  %p142_p10 = scmp.ne.s32.totalorder %s76_s28, %s141_s29 }
  0x24   :  { %p146_p11 = scmp.lt.s32.totalorder %s76_s28, %s76_s28  ;;  %p147_p12 = scmp.lt.s32.totalorder %s141_s29, %s141_s29 }
  0x26   :  { %v56_v1 = vstv %s50_s1  ;;  %p148_p13 = por %p147_p12, %p146_p11 }
  0x27   :  { %v57_v3 = vmul.f32 %v56_v1, %v55_v0 }
  0x28   :  { %v59_v4 = vstv %s87_s25  ;;  %p149_p0 = pnand %p148_p13, %p142_p10 }
  0x29   :  { %s54_s27 = sadd.f32 %s88_s26, %s86_s24  ;;  %v60_v6 = vmul.f32 %v59_v4, %v58_v2 }
  0x2b   :  { %v61_v7 = vadd.f32 %v60_v6, %v57_v3  ;;  %v62_v8 = vstv %s54_s27 }
  0x2d   :  { %v63_v9 = vadd.f32 %v62_v8, %v61_v7 }
  0x2f   :  { %68 = vst.msk [vmem:[#allocation9] sm:$0xf] %vm66_vm0, %v63_v9 }
  0x30   :  { %152 = shalt.err (!%p149_p0)
}
  0x31   :  { %78 = dma.vmem_to_hbm [thread:$0]  %s76_s28, 64, %s208_s3, [#allocation4]  }
  0x32   :  { %167 = dma.done.wait [#allocation4], 64  }
  0x33   :  { %168 = vsyncadd [#allocation4], 4294967232 }
  0x34   :  { %82 = vsyncpa [#allocation3], 1 }
  0x35   :  { %83 = vsyncpa [#allocation8], 1 }
  0x36   :  { %84 = vsyncpa [#allocation4], 1 }
  0x37   :  { %85 = vsyncpa [#allocation5], 1 }

</bundles_post_ra>
